<compile_context>
chip_gen: v5e
topology: v5e:2x2
jax: 0.10.0
libtpu: 0.0.40
codegen_flags: <defaults>
</compile_context>

<pallas_src>
import jax
import jax.numpy as jnp
from jax.experimental import pallas as pl
from jax.experimental.pallas import tpu as pltpu


def _primal_dual_gap_kernel(clam_ref, x_ref, y_ref, f_ref, w_ref, o_ref):
    x = x_ref[0]        # (M, N) primal image
    f = f_ref[0]        # (M, N) observed image
    y0 = y_ref[0]       # (M, N) dual variable, horizontal component
    y1 = y_ref[1]       # (M, N) dual variable, vertical component
    w0 = w_ref[0]       # (M, N) weights, horizontal
    w1 = w_ref[1]       # (M, N) weights, vertical
    clam = clam_ref[0, 0]

    M, N = x.shape

    # --- ForwardWeightedGradient(x, w): forward differences, last col/row -> 0 ---
    x_right = jnp.concatenate([x[:, 1:], x[:, -1:]], axis=1)   # shift left along lanes
    x_down = jnp.concatenate([x[1:, :], x[-1:, :]], axis=0)    # shift up along sublanes
    gh = (x_right - x) * w0    # last column is exactly 0
    gv = (x_down - x) * w1     # last row is exactly 0

    # --- PrimalEnergyROF per-pixel contributions ---
    reg = jnp.abs(gh) + jnp.abs(gv)            # L1 of the weighted gradient
    diff = x - f
    data = 0.5 * clam * diff * diff            # 0.5 * clambda * ||x - f||^2

    # --- BackwardWeightedDivergence(w * y) ---
    yw0 = w0 * y0
    yw1 = w1 * y1
    col = jax.lax.broadcasted_iota(jnp.int32, (M, N), 1)
    row = jax.lax.broadcasted_iota(jnp.int32, (M, N), 0)
    zero_col = jnp.zeros_like(yw0[:, :1])
    zero_row = jnp.zeros_like(yw1[:1, :])
    # d_h[:, 0] = yw0[:, 0]; d_h[:, j] = yw0[:, j] - yw0[:, j-1]; d_h[:, -1] = -yw0[:, -2]
    d_h = jnp.where(col < N - 1, yw0, 0.0) - jnp.concatenate([zero_col, yw0[:, :-1]], axis=1)
    d_v = jnp.where(row < M - 1, yw1, 0.0) - jnp.concatenate([zero_row, yw1[:-1, :]], axis=0)
    div = d_h + d_v

    # --- minus DualEnergyROF per-pixel contributions ---
    r = f - div
    dual = 0.5 * r * r

    contrib = reg + data + dual                                   # (M, N), pure VPU work
    lane_partials = jnp.sum(contrib, axis=0, keepdims=True)       # (1, N) sublane reduce
    o_ref[...] = jnp.sum(lane_partials, axis=1, keepdims=True)    # single final lane reduce


def primal_dual_gap(x, y, im_obs, clambda, w=None):
    """x: (1,M,N), y: (2,M,N), im_obs: (1,M,N), w: (2,M,N) or None, clambda: float."""
    _, M, N = x.shape
    if w is None:
        # Module docstring: w = nn.Parameter(torch.zeros(y.size()))
        w = jnp.zeros_like(y)

    xf = x.astype(jnp.float32)
    yf = y.astype(jnp.float32)
    ff = im_obs.astype(jnp.float32)
    wf = w.astype(jnp.float32)
    clam = jnp.asarray(clambda, jnp.float32).reshape(1, 1)

    mn = M * N
    cost = pl.CostEstimate(
        flops=25 * mn,
        transcendentals=0,
        bytes_accessed=24 * mn + 8,   # 6 f32 planes in + scalar + (1,1) out
    )

    out = pl.pallas_call(
        _primal_dual_gap_kernel,
        out_shape=jax.ShapeDtypeStruct((1, 1), jnp.float32),
        in_specs=[
            pl.BlockSpec(memory_space=pltpu.MemorySpace.SMEM),   # clambda scalar
            pl.BlockSpec(memory_space=pltpu.MemorySpace.VMEM),   # x   (1,M,N)
            pl.BlockSpec(memory_space=pltpu.MemorySpace.VMEM),   # y   (2,M,N)
            pl.BlockSpec(memory_space=pltpu.MemorySpace.VMEM),   # f   (1,M,N)
            pl.BlockSpec(memory_space=pltpu.MemorySpace.VMEM),   # w   (2,M,N)
        ],
        out_specs=pl.BlockSpec(memory_space=pltpu.MemorySpace.VMEM),
        cost_estimate=cost,
    )(clam, xf, yf, ff, wf)
    # PyTorch returns a 0-dim tensor; mirror with a 0-d array.
    return out.reshape(())


def _reference(x, y, im_obs, clambda, w):
    """Pure-JAX mirror of the PyTorch module (for the in-script sanity check)."""
    x2, f = x[0], im_obs[0]
    y0, y1 = y[0], y[1]
    w0, w1 = w[0], w[1]
    M, N = x2.shape

    # ForwardWeightedGradient
    gh = jnp.zeros((M, N), jnp.float32).at[:, :-1].set(x2[:, 1:] - x2[:, :-1]) * w0
    gv = jnp.zeros((M, N), jnp.float32).at[:-1, :].set(x2[1:, :] - x2[:-1, :]) * w1
    energy_reg = jnp.sum(jnp.abs(gh)) + jnp.sum(jnp.abs(gv))
    energy_data = 0.5 * clambda * jnp.sum((x2 - f) ** 2)
    primal = energy_reg + energy_data

    # BackwardWeightedDivergence
    yw0, yw1 = w0 * y0, w1 * y1
    d_h = jnp.zeros((M, N), jnp.float32)
    d_h = d_h.at[:, 0].set(yw0[:, 0])
    d_h = d_h.at[:, 1:-1].set(yw0[:, 1:-1] - yw0[:, :-2])
    d_h = d_h.at[:, -1].set(-yw0[:, -2])
    d_v = jnp.zeros((M, N), jnp.float32)
    d_v = d_v.at[0, :].set(yw1[0, :])
    d_v = d_v.at[1:-1, :].set(yw1[1:-1, :] - yw1[:-2, :])
    d_v = d_v.at[-1, :].set(-yw1[-2, :])
    div = d_h + d_v
    dual = -0.5 * jnp.sum((f - div) ** 2)
    return primal - dual


if __name__ == "__main__":
    key = jax.random.PRNGKey(0)
    k1, k2, k3, k4 = jax.random.split(key, 4)

    M, N = 16, 16
    x = jax.random.normal(k1, (1, M, N), dtype=jnp.float32)
    y = jax.random.normal(k2, (2, M, N), dtype=jnp.float32)
    im_obs = jax.random.normal(k3, (1, M, N), dtype=jnp.float32)
    # Non-trivial deterministic weights so the gradient/divergence paths are exercised
    # (the docstring's zero-initialized parameter would make them vanish).
    w = jax.random.uniform(k4, (2, M, N), dtype=jnp.float32, minval=0.5, maxval=1.5)
    clambda = 0.7

    out = jax.block_until_ready(primal_dual_gap(x, y, im_obs, clambda, w))

    ref = _reference(x, y, im_obs, clambda, w)
    assert jnp.allclose(out, ref, rtol=1e-4, atol=1e-4), (out, ref)

    # Also check the docstring default (w = zeros).
    out0 = jax.block_until_ready(primal_dual_gap(x, y, im_obs, clambda))
    ref0 = _reference(x, y, im_obs, clambda, jnp.zeros_like(y))
    assert jnp.allclose(out0, ref0, rtol=1e-4, atol=1e-4), (out0, ref0)

    print("KERNEL_OK")
</pallas_src>

<mosaic_0001>
module attributes {stable_mosaic.version = 11 : i64} {
  func.func @_primal_dual_gap_kernel(%arg0: memref<1x1xf32, #tpu.memory_space<smem>>, %arg1: memref<1x16x16xf32, #tpu.memory_space<vmem>>, %arg2: memref<2x16x16xf32, #tpu.memory_space<vmem>>, %arg3: memref<1x16x16xf32, #tpu.memory_space<vmem>>, %arg4: memref<2x16x16xf32, #tpu.memory_space<vmem>>, %arg5: memref<1x1xf32, #tpu.memory_space<vmem>>) attributes {dimension_semantics = [], scalar_prefetch = 0 : i64, scratch_operands = 0 : i64, tpu.core_type = #tpu.core_type<tc>} {
    %c0 = arith.constant 0 : index
    %c0_0 = arith.constant 0 : index
    %c0_1 = arith.constant 0 : index
    %0 = vector.load %arg1[%c0, %c0_0, %c0_1] : memref<1x16x16xf32, #tpu.memory_space<vmem>>, vector<1x16x16xf32>
    %1 = vector.shape_cast %0 : vector<1x16x16xf32> to vector<16x16xf32>
    %c0_2 = arith.constant 0 : index
    %c0_3 = arith.constant 0 : index
    %c0_4 = arith.constant 0 : index
    %2 = vector.load %arg3[%c0_2, %c0_3, %c0_4] : memref<1x16x16xf32, #tpu.memory_space<vmem>>, vector<1x16x16xf32>
    %3 = vector.shape_cast %2 : vector<1x16x16xf32> to vector<16x16xf32>
    %c0_5 = arith.constant 0 : index
    %c0_6 = arith.constant 0 : index
    %c0_7 = arith.constant 0 : index
    %4 = vector.load %arg2[%c0_5, %c0_6, %c0_7] : memref<2x16x16xf32, #tpu.memory_space<vmem>>, vector<1x16x16xf32>
    %5 = vector.shape_cast %4 : vector<1x16x16xf32> to vector<16x16xf32>
    %c1 = arith.constant 1 : index
    %c0_8 = arith.constant 0 : index
    %c0_9 = arith.constant 0 : index
    %6 = vector.load %arg2[%c1, %c0_8, %c0_9] : memref<2x16x16xf32, #tpu.memory_space<vmem>>, vector<1x16x16xf32>
    %7 = vector.shape_cast %6 : vector<1x16x16xf32> to vector<16x16xf32>
    %c0_10 = arith.constant 0 : index
    %c0_11 = arith.constant 0 : index
    %c0_12 = arith.constant 0 : index
    %8 = vector.load %arg4[%c0_10, %c0_11, %c0_12] : memref<2x16x16xf32, #tpu.memory_space<vmem>>, vector<1x16x16xf32>
    %9 = vector.shape_cast %8 : vector<1x16x16xf32> to vector<16x16xf32>
    %c1_13 = arith.constant 1 : index
    %c0_14 = arith.constant 0 : index
    %c0_15 = arith.constant 0 : index
    %10 = vector.load %arg4[%c1_13, %c0_14, %c0_15] : memref<2x16x16xf32, #tpu.memory_space<vmem>>, vector<1x16x16xf32>
    %11 = vector.shape_cast %10 : vector<1x16x16xf32> to vector<16x16xf32>
    %c0_16 = arith.constant 0 : index
    %c0_17 = arith.constant 0 : index
    %12 = memref.load %arg0[%c0_16, %c0_17] : memref<1x1xf32, #tpu.memory_space<smem>>
    %13 = vector.extract_strided_slice %1 {offsets = [0, 1], sizes = [16, 15], strides = [1, 1]} : vector<16x16xf32> to vector<16x15xf32>
    %14 = vector.extract_strided_slice %1 {offsets = [0, 15], sizes = [16, 1], strides = [1, 1]} : vector<16x16xf32> to vector<16x1xf32>
    %15 = tpu.concatenate %13, %14 in 1 : vector<16x15xf32>, vector<16x1xf32> -> vector<16x16xf32>
    %16 = vector.extract_strided_slice %1 {offsets = [1, 0], sizes = [15, 16], strides = [1, 1]} : vector<16x16xf32> to vector<15x16xf32>
    %17 = vector.extract_strided_slice %1 {offsets = [15, 0], sizes = [1, 16], strides = [1, 1]} : vector<16x16xf32> to vector<1x16xf32>
    %18 = tpu.concatenate %16, %17 in 0 : vector<15x16xf32>, vector<1x16xf32> -> vector<16x16xf32>
    %19 = arith.subf %15, %1 : vector<16x16xf32>
    %20 = arith.mulf %19, %9 : vector<16x16xf32>
    %21 = arith.subf %18, %1 : vector<16x16xf32>
    %22 = arith.mulf %21, %11 : vector<16x16xf32>
    %23 = math.absf %20 : vector<16x16xf32>
    %24 = math.absf %22 : vector<16x16xf32>
    %25 = arith.addf %23, %24 : vector<16x16xf32>
    %26 = arith.subf %1, %3 : vector<16x16xf32>
    %cst = arith.constant 5.000000e-01 : f32
    %27 = arith.mulf %cst, %12 : f32
    %28 = vector.broadcast %27 : f32 to vector<16x16xf32>
    %29 = arith.mulf %28, %26 : vector<16x16xf32>
    %30 = arith.mulf %29, %26 : vector<16x16xf32>
    %31 = arith.mulf %9, %5 : vector<16x16xf32>
    %32 = arith.mulf %11, %7 : vector<16x16xf32>
    %33 = tpu.iota {dimensions = array<i32: 1>} : vector<16x16xi32>
    %34 = tpu.iota {dimensions = array<i32: 0>} : vector<16x16xi32>
    %cst_18 = arith.constant 0.000000e+00 : f32
    %35 = vector.broadcast %cst_18 : f32 to vector<16x1xf32>
    %cst_19 = arith.constant 0.000000e+00 : f32
    %36 = vector.broadcast %cst_19 : f32 to vector<1x16xf32>
    %c15_i32 = arith.constant 15 : i32
    %37 = vector.broadcast %c15_i32 : i32 to vector<16x16xi32>
    %38 = arith.cmpi slt, %33, %37 : vector<16x16xi32>
    %cst_20 = arith.constant 0.000000e+00 : f32
    %39 = vector.broadcast %cst_20 : f32 to vector<16x16xf32>
    %40 = arith.select %38, %31, %39 : vector<16x16xi1>, vector<16x16xf32>
    %41 = vector.extract_strided_slice %31 {offsets = [0, 0], sizes = [16, 15], strides = [1, 1]} : vector<16x16xf32> to vector<16x15xf32>
    %42 = tpu.concatenate %35, %41 in 1 : vector<16x1xf32>, vector<16x15xf32> -> vector<16x16xf32>
    %43 = arith.subf %40, %42 : vector<16x16xf32>
    %c15_i32_21 = arith.constant 15 : i32
    %44 = vector.broadcast %c15_i32_21 : i32 to vector<16x16xi32>
    %45 = arith.cmpi slt, %34, %44 : vector<16x16xi32>
    %cst_22 = arith.constant 0.000000e+00 : f32
    %46 = vector.broadcast %cst_22 : f32 to vector<16x16xf32>
    %47 = arith.select %45, %32, %46 : vector<16x16xi1>, vector<16x16xf32>
    %48 = vector.extract_strided_slice %32 {offsets = [0, 0], sizes = [15, 16], strides = [1, 1]} : vector<16x16xf32> to vector<15x16xf32>
    %49 = tpu.concatenate %36, %48 in 0 : vector<1x16xf32>, vector<15x16xf32> -> vector<16x16xf32>
    %50 = arith.subf %47, %49 : vector<16x16xf32>
    %51 = arith.addf %43, %50 : vector<16x16xf32>
    %52 = arith.subf %3, %51 : vector<16x16xf32>
    %cst_23 = arith.constant 5.000000e-01 : f32
    %53 = vector.broadcast %cst_23 : f32 to vector<16x16xf32>
    %54 = arith.mulf %53, %52 : vector<16x16xf32>
    %55 = arith.mulf %54, %52 : vector<16x16xf32>
    %56 = arith.addf %25, %30 : vector<16x16xf32>
    %57 = arith.addf %56, %55 : vector<16x16xf32>
    %cst_24 = arith.constant dense<0.000000e+00> : vector<16xf32>
    %58 = vector.multi_reduction <add>, %57, %cst_24 [0] : vector<16x16xf32> to vector<16xf32>
    %59 = vector.shape_cast %58 : vector<16xf32> to vector<1x16xf32>
    %cst_25 = arith.constant dense<0.000000e+00> : vector<1xf32>
    %60 = vector.multi_reduction <add>, %59, %cst_25 [1] : vector<1x16xf32> to vector<1xf32>
    %61 = vector.shape_cast %60 : vector<1xf32> to vector<1x1xf32>
    %c0_26 = arith.constant 0 : index
    %c0_27 = arith.constant 0 : index
    %62 = vector.load %arg5[%c0_26, %c0_27] : memref<1x1xf32, #tpu.memory_space<vmem>>, vector<1x1xf32>
    tpu.vector_store %arg5[%c0_26, %c0_27], %61 {strides = array<i32>} : memref<1x1xf32, #tpu.memory_space<vmem>>, vector<1x1xf32>,
    return
  }
}

</mosaic_0001>

<bundles_post_ra>
// kernel: tpu_custom_call.1
= control target key start
LH: loop header
LB: loop body
LE: loop exit
PB: predicated region body
PF: predicated region fallthrough
CT: control target
= control target key end

     0   :  { %11 = vsyncpa [#allocation4], 0  ;;  %s443_s0 = inlined_call_operand.<no memory space> [shape: f32[1,1], index: 0, kind: input, shape index: {}]   ;;  %s444_s1 = inlined_call_operand.hbm [shape: f32[1,16,16], index: 1, kind: input, shape index: {}]   ;;  %s445_s2 = inlined_call_operand.hbm [shape: f32[2,16,16], index: 2, kind: input, shape index: {}]   ;;  %s446_s3 = inlined_call_operand.hbm [shape: f32[1,16,16], index: 3, kind: input, shape index: {}]   ;;  %s447_s4 = inlined_call_operand.hbm [shape: f32[2,16,16], index: 4, kind: input, shape index: {}]   ;;  %s448_s5 = inlined_call_operand.hbm [shape: f32[1,1], index: 5, kind: output, shape index: {}]  }
   0x1   :  { %12 = vsyncpa [#allocation7], 0 }
   0x2   :  { %13 = vsyncpa [#allocation10], 0 }
   0x3   :  { %14 = vsyncpa [#allocation5], 0  ;;  %s34_s20 = sshll.u32 %s445_s2, 4  ;;  %s363_s21 = smov [#allocation6]   ;;  %s35_s20 = int_to_ptr.hbm [resolvable:$true] %s34_s20 }
   0x4   :  { %s36_s22 = sshll.u32 %s363_s21, 4  ;;  %s21_s25 = sshll.u32 %s444_s1, 4  ;;  %s37_s22 = int_to_ptr.vmem [resolvable:$true] %s36_s22  ;;  %s22_s25 = int_to_ptr.hbm [resolvable:$true] %s21_s25 }
   0x5   :  { %s364_s26 = smov 128   ;;  %s365_s27 = smov 8  }
   0x6   :  { %42 = dma.hbm_to_vmem [thread:$0]  %s35_s20, 512, %s37_s22, [#allocation7], %s364_s26, %s364_s26, %s365_s27  }
   0x7   :  { %s366_s28 = smov [#allocation3]   ;;  %s47_s7 = sshll.u32 %s446_s3, 4  ;;  %s48_s7 = int_to_ptr.hbm [resolvable:$true] %s47_s7 }
   0x8   :  { %s23_s29 = sshll.u32 %s366_s28, 4  ;;  %s60_s9 = sshll.u32 %s447_s4, 4  ;;  %s24_s29 = int_to_ptr.vmem [resolvable:$true] %s23_s29  ;;  %s61_s9 = int_to_ptr.hbm [resolvable:$true] %s60_s9 }
   0x9   :  { %29 = dma.hbm_to_vmem [thread:$0]  %s22_s25, 256, %s24_s29, [#allocation4], %s364_s26, %s364_s26, %s365_s27  }
   0xa   :  { %s367_s10 = smov [#allocation8]   ;;  %s368_s1 = smov [#allocation9]  }
   0xb   :  { %s49_s11 = sshll.u32 %s367_s10, 4  ;;  %s62_s12 = sshll.u32 %s368_s1, 4  ;;  %s50_s11 = int_to_ptr.vmem [resolvable:$true] %s49_s11  ;;  %s63_s12 = int_to_ptr.vmem [resolvable:$true] %s62_s12 }
   0xc   :  { %55 = dma.hbm_to_vmem [thread:$0]  %s48_s7, 256, %s50_s11, [#allocation7], %s364_s26, %s364_s26, %s365_s27  }
   0xd   :  { %68 = dma.hbm_to_vmem [thread:$0]  %s61_s9, 512, %s63_s12, [#allocation10], %s364_s26, %s364_s26, %s365_s27  }
   0xe   :  { %355 = dma.done.wait [#allocation4], 256  }
   0xf   :  { %356 = vsyncadd [#allocation4], 4294967040 }
  0x10   :  { %357 = dma.done.wait [#allocation7], 768  }
  0x11   :  { %358 = vsyncadd [#allocation7], 4294966528 }
  0x12   :  { %359 = dma.done.wait [#allocation10], 512  }
  0x13   :  { %360 = vsyncadd [#allocation10], 4294966784  ;;  %v89_v0 = vld [vmem:[#allocation6] sm:$0xff]  ;;  %v94_v1 = vld [vmem:[#allocation9] sm:$0xff]  ;;  %s369_s3 = smov 127   ;;  %s370_s4 = smov 1   ;;  %v144_v10 = vlaneseq }
  0x14   :  { %v85_v2 = vld [vmem:[#allocation3] sm:$0xff]  ;;  %v140_v3 = vmul.f32 %v94_v1, %v89_v0  ;;  %v90_v4 = vld [vmem:[#allocation6 + $0x8] sm:$0xff]  ;;  %v414_v5 = vld [vmem:[#allocation9 + $0x8] sm:$0xff]  ;;  %vm111_vm0 = vcmask 1046528   ;;  %vm171_vm1 = vcmask 1040384   ;;  %s134_s15 = smul.f32 0.5, %s443_s0 }
  0x15   :  { %102 = vrot.lane.b32.xlu0 %v85_v2, %s369_s3  ;;  %v416_v6 = vld [vmem:[#allocation3 + $0x8] sm:$0xff]  ;;  %v141_v7 = vmul.f32 %v414_v5, %v90_v4  ;;  %v92_v8 = vld [vmem:[#allocation6 + $0x10] sm:$0xff]  ;;  %v97_v9 = vld [vmem:[#allocation9 + $0x10] sm:$0xff]  ;;  %v112_v12 = vrot.slane %v85_v2, 1  ;;  %v145_v14 = vand.u32 127, %v144_v10  ;;  %v147_v16 = vshrl.u32 %v144_v10, 7 }
  0x16   :  { %154 = vrot.lane.b32.xlu1 %v140_v3, %s370_s4  ;;  %v142_v11 = vmul.f32 %v97_v9, %v92_v8  ;;  %v113_v13 = vrot.slane %v416_v6, 1  ;;  %v93_v17 = vld [vmem:[#allocation6 + $0x18] sm:$0xff]  ;;  %v98_v18 = vld [vmem:[#allocation9 + $0x18] sm:$0xff]  ;;  %vm108_vm3 = vcmask 121856   ;;  %vm160_vm4 = vcmask 7168   ;;  %v87_v22 = vld [vmem:[#allocation8] sm:$0xff] }
  0x17   :  { %vm149_vm2 = vcmp.lt.s32.totalorder %v145_v14, 15  ;;  %v143_v21 = vmul.f32 %v98_v18, %v93_v17  ;;  %v148_v25 = vadd.s32 8, %v147_v16  ;;  %v135_v29 = vstv %s134_s15  ;;  %v88_v36 = vld [vmem:[#allocation8 + $0x8] sm:$0xff]  ;;  %s371_s0 = smov [#allocation11]   ;;  %s214_s19 = sshll.u32 %s448_s5, 4  ;;  %s215_s19 = int_to_ptr.hbm [resolvable:$true] %s214_s19 }
  0x18   :  { %v172_v15 = vrot.slane %v142_v11, 7  ;;  %v114_v19 = vsel %vm111_vm0, %v112_v12, %v113_v13  ;;  %v117_v26 = vsel %vm111_vm0, %v113_v13, %v416_v6  ;;  %v150_v27 = vsel %vm149_vm2, %v140_v3, 0.0  ;;  %s212_s16 = sshll.u32 %s371_s0, 4  ;;  %s213_s16 = int_to_ptr.vmem [resolvable:$true] %s212_s16 }
  0x19   :  { %v122_v23 = vsub.f32 %v114_v19, %v85_v2  ;;  %v132_v33 = vsub.f32 %v85_v2, %v87_v22  ;;  %v173_v35 = vrot.slane %v143_v21, 7  ;;  %v123_v37 = vsub.f32 %v117_v26, %v416_v6 }
  0x1a   :  { %v177_v20 = vsel %vm171_vm1, 0.0, %v172_v15  ;;  %vm166_vm5 = vcmp.lt.s32.totalorder %v148_v25, 15  ;;  %v133_v42 = vsub.f32 %v416_v6, %v88_v36  ;;  %v151_v51 = vsel %vm149_vm2, %v141_v7, 0.0 }
  0x1b   :  { %v178_v30 = vsub.f32 %v142_v11, %v177_v20  ;;  %v124_v38 = vmul.f32 %v122_v23, %v97_v9  ;;  %v136_v43 = vmul.f32 %v135_v29, %v132_v33  ;;  %v168_v44 = vsel %vm166_vm5, %v143_v21, 0.0 }
  0x1c   :  { %v174_v45 = vsel %vm171_vm1, %v172_v15, %v173_v35  ;;  %v125_v46 = vmul.f32 %v123_v37, %v98_v18  ;;  %v137_v55 = vmul.f32 %v135_v29, %v133_v42  ;;  %vm192_vm6 = vcmask 130048  }
  0x1d   :  { %104 = vrot.lane.b32.xlu0 %v416_v6, %s369_s3  ;;  %v128_v49 = vand.u32 2147483647, %v124_v38  ;;  %v179_v53 = vsub.f32 %v168_v44, %v174_v45  ;;  %v138_v57 = vmul.f32 %v136_v43, %v132_v33  ;;  %vm205_vm7 = vcmask 0  }
  0x1e   :  { %156 = vrot.lane.b32.xlu1 %v141_v7, %s370_s4  ;;  %v129_v59 = vand.u32 2147483647, %v125_v46  ;;  %v139_v0 = vmul.f32 %v137_v55, %v133_v42 }
  0x87   :  { %v103_v24 = vpop.permute.xlu0 %102 }
  0x88   :  { %v109_v28 = vsel %vm108_vm3, %v103_v24, %v85_v2  ;;  %v155_v31 = vpop.permute.xlu1 %154 }
  0x89   :  { %v118_v32 = vsub.f32 %v109_v28, %v85_v2  ;;  %v161_v34 = vsel %vm160_vm4, 0.0, %v155_v31 }
  0x8a   :  { %v163_v39 = vsub.f32 %v150_v27, %v161_v34 }
  0x8b   :  { %v120_v40 = vmul.f32 %v118_v32, %v94_v1 }
  0x8c   :  { %v180_v41 = vadd.f32 %v178_v30, %v163_v39 }
  0x8d   :  { %v126_v48 = vand.u32 2147483647, %v120_v40 }
  0x8e   :  { %v182_v47 = vsub.f32 %v87_v22, %v180_v41 }
  0x8f   :  { %v105_v50 = vpop.permute.xlu0 %104  ;;  %v130_v61 = vadd.f32 %v128_v49, %v126_v48 }
  0x90   :  { %v110_v52 = vsel %vm108_vm3, %v105_v50, %v416_v6  ;;  %v157_v54 = vpop.permute.xlu1 %156  ;;  %v184_v60 = vmul.f32 0.5, %v182_v47 }
  0x91   :  { %v119_v56 = vsub.f32 %v110_v52, %v416_v6  ;;  %v162_v58 = vsel %vm160_vm4, 0.0, %v157_v54  ;;  %v188_v8 = vadd.f32 %v138_v57, %v130_v61 }
  0x92   :  { %v164_v62 = vsub.f32 %v151_v51, %v162_v58  ;;  %v186_v3 = vmul.f32 %v184_v60, %v182_v47 }
  0x93   :  { %v121_v63 = vmul.f32 %v119_v56, %v414_v5 }
  0x94   :  { %v181_v1 = vadd.f32 %v179_v53, %v164_v62  ;;  %v190_v6 = vadd.f32 %v188_v8, %v186_v3 }
  0x95   :  { %v127_v2 = vand.u32 2147483647, %v121_v63 }
  0x96   :  { %v183_v4 = vsub.f32 %v88_v36, %v181_v1  ;;  %v193_v13 = vsel %vm192_vm6, %v190_v6, 0.0 }
  0x97   :  { %v131_v7 = vadd.f32 %v129_v59, %v127_v2 }
  0x98   :  { %v185_v9 = vmul.f32 0.5, %v183_v4 }
  0x99   :  { %v189_v10 = vadd.f32 %v139_v0, %v131_v7 }
  0x9a   :  { %v187_v11 = vmul.f32 %v185_v9, %v183_v4 }
  0x9c   :  { %v191_v12 = vadd.f32 %v189_v10, %v187_v11 }
  0x9e   :  { %v194_v14 = vsel %vm192_vm6, %v191_v12, 0.0 }
  0x9f   :  { %v195_v15 = vadd.f32 %v194_v14, %v193_v13 }
  0xa1   :  { %v196_v16 = vrot.slane %v195_v15, 4 }
  0xa3   :  { %v197_v17 = vadd.f32 %v196_v16, %v195_v15 }
  0xa5   :  { %v198_v18 = vrot.slane %v197_v17, 2 }
  0xa7   :  { %v199_v5 = vadd.f32 %v198_v18, %v197_v17 }
  0xa9   :  { %v200_v19 = vrot.slane %v199_v5, 1 }
  0xab   :  { %v201_v20 = vadd.f32 %v200_v19, %v199_v5 }
  0xad   :  { %v202_v21 = vsel %vm192_vm6, %v201_v20, 0.0 }
  0xae   :  { %203 = vadd.xlane.f32.xlu2 %v202_v21 }
 0x121   :  { %v204_v22 = vpop.xlane.xlu2 %203 }
 0x122   :  { %206 = vst.msk [vmem:[#allocation11] sm:$0x1] %vm205_vm7, %v204_v22 }
 0x123   :  { %217 = dma.vmem_to_hbm [thread:$0]  %s213_s16, 16, %s215_s19, [#allocation5]  }
 0x124   :  { %361 = dma.done.wait [#allocation5], 16  }
 0x125   :  { %362 = vsyncadd [#allocation5], 4294967280 }
 0x126   :  { %222 = vsyncpa [#allocation4], 1 }
 0x127   :  { %223 = vsyncpa [#allocation7], 1 }
 0x128   :  { %224 = vsyncpa [#allocation10], 1 }
 0x129   :  { %225 = vsyncpa [#allocation5], 1 }

</bundles_post_ra>
